<compile_context>
chip_gen: v7x
topology: tpu7x:2x2x1
jax: 0.10.0
libtpu: 0.0.40
codegen_flags: <defaults>
</compile_context>

<pallas_src>
import functools

import jax
import jax.numpy as jnp
from jax.experimental import pallas as pl
from jax.experimental.pallas import tpu as pltpu

_EPS = 1e-12      # torch F.normalize eps
_SLOPE = 0.2      # LeakyReLU negative_slope
_LANE = 128
_SUBLANE = 8
_TM_MAX = 8192    # past this, per-grid-step overhead is fully amortized


def _round_up(x, m):
    return ((x + m - 1) // m) * m


def _cdiv(a, b):
    return (a + b - 1) // b


def _vmem_limits():
    """Generation-aware scoped-VMEM request and planning budget (bytes)."""
    try:
        phys = int(pltpu.get_tpu_info().vmem_capacity_bytes)
    except Exception:
        phys = 64 * 1024 * 1024          # conservative fallback: v7x per-TC VMEM
    limit = (phys * 3) // 4              # requested scoped limit (48 MiB on v7x, 96 MiB on v5e/v6e)
    budget = (limit * 4) // 5            # planning budget (headroom for Mosaic scratch)
    return int(limit), int(budget)


def _leaky_relu(h):
    return jnp.where(h > 0, h, _SLOPE * h)


def _l2_normalize_rows(h):
    # == torch.nn.functional.normalize(h, dim=1, p=2): h / max(||h||, eps)
    # rsqrt(max(sumsq, eps^2)) == 1 / max(sqrt(sumsq), eps); runs on the EUP.
    sumsq = jnp.sum(h * h, axis=1, keepdims=True)
    return h * jax.lax.rsqrt(jnp.maximum(sumsq, _EPS * _EPS))


# ---------------- kernels ----------------

def _proj_single_kernel(x_ref, w_ref, b_ref, o_ref):
    x = x_ref[...].astype(w_ref.dtype)            # in-kernel cast: no extra HBM pass
    h = jnp.dot(x, w_ref[...], preferred_element_type=jnp.float32)
    h = _leaky_relu(h + b_ref[...])
    o_ref[...] = _l2_normalize_rows(h).astype(o_ref.dtype)


def _proj_double_kernel(x_ref, w1_ref, b1_ref, w2_ref, b2_ref, o_ref):
    x = x_ref[...].astype(w1_ref.dtype)
    h = jnp.dot(x, w1_ref[...], preferred_element_type=jnp.float32)
    h = _leaky_relu(h + b1_ref[...])
    h = jnp.dot(h.astype(w2_ref.dtype), w2_ref[...],
                preferred_element_type=jnp.float32)
    h = _leaky_relu(h + b2_ref[...])
    o_ref[...] = _l2_normalize_rows(h).astype(o_ref.dtype)


# ---------------- jit-cached pallas_call wrappers ----------------

@functools.partial(jax.jit, static_argnames=("tm", "out_dtype", "vmem_limit"))
def _apply_single(x, w, b, *, tm, out_dtype, vmem_limit):
    n, d_in = x.shape
    d_out_p = w.shape[1]
    return pl.pallas_call(
        _proj_single_kernel,
        out_shape=jax.ShapeDtypeStruct((n, d_out_p), out_dtype),
        grid=(pl.cdiv(n, tm),),
        in_specs=[
            pl.BlockSpec((tm, d_in), lambda i: (i, 0)),       # streamed batch tiles
            pl.BlockSpec((d_in, d_out_p), lambda i: (0, 0)),  # VMEM-resident weight
            pl.BlockSpec((1, d_out_p), lambda i: (0, 0)),     # VMEM-resident bias
        ],
        out_specs=pl.BlockSpec((tm, d_out_p), lambda i: (i, 0)),
        compiler_params=pltpu.CompilerParams(
            dimension_semantics=("parallel",),
            vmem_limit_bytes=vmem_limit),
    )(x, w, b)


@functools.partial(jax.jit, static_argnames=("tm", "out_dtype", "vmem_limit"))
def _apply_double(x, w1, b1, w2, b2, *, tm, out_dtype, vmem_limit):
    n, d_in = x.shape
    d_mid_p = w1.shape[1]
    d_out_p = w2.shape[1]
    return pl.pallas_call(
        _proj_double_kernel,
        out_shape=jax.ShapeDtypeStruct((n, d_out_p), out_dtype),
        grid=(pl.cdiv(n, tm),),
        in_specs=[
            pl.BlockSpec((tm, d_in), lambda i: (i, 0)),
            pl.BlockSpec((d_in, d_mid_p), lambda i: (0, 0)),
            pl.BlockSpec((1, d_mid_p), lambda i: (0, 0)),
            pl.BlockSpec((d_mid_p, d_out_p), lambda i: (0, 0)),
            pl.BlockSpec((1, d_out_p), lambda i: (0, 0)),
        ],
        out_specs=pl.BlockSpec((tm, d_out_p), lambda i: (i, 0)),
        compiler_params=pltpu.CompilerParams(
            dimension_semantics=("parallel",),
            vmem_limit_bytes=vmem_limit),
    )(x, w1, b1, w2, b2)


# ---------------- wrapper / "module" ----------------

class Projector:
    """JAX/Pallas port of the PyTorch Projector module."""

    def __init__(self, d_input, d_common, layer, key=None,
                 compute_dtype=jnp.float32, out_dtype=None):
        if key is None:
            key = jax.random.PRNGKey(0)
        self.layer = layer.lower()
        self.d_input = d_input
        self.d_common = d_common
        self.compute_dtype = compute_dtype
        self.out_dtype = compute_dtype if out_dtype is None else out_dtype
        d_common_p = _round_up(d_common, _LANE)
        self.d_common_p = d_common_p
        w_item = jnp.dtype(compute_dtype).itemsize
        out_item = jnp.dtype(self.out_dtype).itemsize

        if self.layer == 'single':
            k1, k2 = jax.random.split(key, 2)
            w1 = 0.01 * jax.random.normal(k1, (d_common, d_input), jnp.float32)
            b1 = 0.01 * jax.random.normal(k2, (d_common,), jnp.float32)
            self._ref_params = (w1, b1)
            # stored as (d_in, d_out) with the out dim zero-padded to a lane multiple
            self.w1 = jnp.pad(w1.T, ((0, 0), (0, d_common_p - d_common))
                              ).astype(compute_dtype)
            self.b1 = jnp.pad(b1, (0, d_common_p - d_common)
                              ).reshape(1, d_common_p).astype(jnp.float32)
            resident = self.w1.size * w_item + self.b1.size * 4
            # per-row VMEM: 2x double-buffered x tile (assume f32 x), 2x output
            # tile, f32 h + elementwise temporaries.
            per_row = (2 * d_input * 4
                       + 2 * d_common_p * out_item
                       + 2 * d_common_p * 4)
        elif self.layer == 'double':
            d_mid = int((d_input + d_common) / 2)
            d_mid_p = _round_up(d_mid, _LANE)
            self.d_mid, self.d_mid_p = d_mid, d_mid_p
            k1, k2, k3, k4 = jax.random.split(key, 4)
            w1 = 0.01 * jax.random.normal(k1, (d_mid, d_input), jnp.float32)
            b1 = 0.01 * jax.random.normal(k2, (d_mid,), jnp.float32)
            w2 = 0.01 * jax.random.normal(k3, (d_common, d_mid), jnp.float32)
            b2 = 0.01 * jax.random.normal(k4, (d_common,), jnp.float32)
            self._ref_params = (w1, b1, w2, b2)
            self.w1 = jnp.pad(w1.T, ((0, 0), (0, d_mid_p - d_mid))
                              ).astype(compute_dtype)
            self.b1 = jnp.pad(b1, (0, d_mid_p - d_mid)
                              ).reshape(1, d_mid_p).astype(jnp.float32)
            self.w2 = jnp.pad(w2.T, ((0, d_mid_p - d_mid),
                                     (0, d_common_p - d_common))
                              ).astype(compute_dtype)
            self.b2 = jnp.pad(b2, (0, d_common_p - d_common)
                              ).reshape(1, d_common_p).astype(jnp.float32)
            resident = (self.w1.size * w_item + self.w2.size * w_item
                        + (self.b1.size + self.b2.size) * 4)
            # add f32 mid activation + its compute-dtype copy for the 2nd matmul
            per_row = (2 * d_input * 4
                       + 2 * d_common_p * out_item
                       + 2 * d_common_p * 4
                       + d_mid_p * (4 + w_item))
        else:
            raise Exception('Input layer invalid! ')

        # ---- generation-aware batch-tile sizing (independent of batch size) ----
        limit, budget = _vmem_limits()
        self._vmem_limit = limit
        # BlockSpec pipelining double-buffers even constant-index blocks, so the
        # resident weights/biases are counted twice.
        avail = max(budget - 2 * resident, 0)
        tm = avail // max(per_row, 1)
        if tm >= 512:
            tm = min((tm // 512) * 512, _TM_MAX)
        else:
            tm = max((tm // _SUBLANE) * _SUBLANE, _SUBLANE)
        self._tm_budget = int(tm)

    def _choose_tm(self, n):
        tm = self._tm_budget
        # Keep >=2 grid steps for large batches so the "parallel" batch axis can
        # shard across v7x's two TensorCores (no-op on single-TC v5e/v6e).
        if n >= 1024:
            tm = min(tm, _round_up(_cdiv(n, 2), 512))
        # Clamp by the (sublane-rounded) batch; no wrapper-side padding of x —
        # the final partial tile's out-of-bounds rows are row-independent and
        # their writes are dropped.
        return int(min(tm, max(_SUBLANE, _round_up(n, _SUBLANE))))

    def __call__(self, x):
        n = x.shape[0]
        tm = self._choose_tm(n)
        if self.layer == 'single':
            out = _apply_single(x, self.w1, self.b1, tm=tm,
                                out_dtype=self.out_dtype,
                                vmem_limit=self._vmem_limit)
        else:
            out = _apply_double(x, self.w1, self.b1, self.w2, self.b2, tm=tm,
                                out_dtype=self.out_dtype,
                                vmem_limit=self._vmem_limit)
        return out[:, :self.d_common]

    # pure-JAX reference for validation (uses the unpadded f32 parameters)
    def reference(self, x):
        x = x.astype(jnp.float32)
        if self.layer == 'single':
            w1, b1 = self._ref_params
            h = _leaky_relu(x @ w1.T + b1)
        else:
            w1, b1, w2, b2 = self._ref_params
            h = _leaky_relu(x @ w1.T + b1)
            h = _leaky_relu(h @ w2.T + b2)
        norm = jnp.sqrt(jnp.sum(h * h, axis=1, keepdims=True))
        return h / jnp.maximum(norm, _EPS)


if __name__ == "__main__":
    key = jax.random.PRNGKey(0)
    kx, kp1, kp2, kp3 = jax.random.split(key, 4)

    batch, d_input, d_common = 10, 32, 16   # non-multiple-of-tile batch exercises the partial-tile path
    x = jax.random.normal(kx, (batch, d_input), jnp.float32)

    # single-layer projector (f32 end-to-end, matches PyTorch numerics)
    proj_s = Projector(d_input, d_common, 'single', key=kp1)
    out_s = jax.block_until_ready(proj_s(x))
    ref_s = proj_s.reference(x)

    # double-layer projector (f32)
    proj_d = Projector(d_input, d_common, 'double', key=kp2)
    out_d = jax.block_until_ready(proj_d(x))
    ref_d = proj_d.reference(x)

    assert out_s.shape == (batch, d_common)
    assert out_d.shape == (batch, d_common)
    assert jnp.allclose(out_s, ref_s, atol=1e-5, rtol=1e-5)
    assert jnp.allclose(out_d, ref_d, atol=1e-5, rtol=1e-5)

    # opt-in bf16 matmul/output path (MXU-native on v6e/v7x); looser tolerance
    proj_b = Projector(d_input, d_common, 'double', key=kp3,
                       compute_dtype=jnp.bfloat16)
    out_b = jax.block_until_ready(proj_b(x))
    ref_b = proj_b.reference(x)
    assert out_b.shape == (batch, d_common)
    assert jnp.allclose(out_b.astype(jnp.float32), ref_b, atol=5e-2, rtol=5e-2)

    print("KERNEL_OK")
</pallas_src>

<mosaic_0001>
module attributes {stable_mosaic.version = 11 : i64} {
  func.func @_proj_single_kernel(%arg0: i32, %arg1: memref<16x32xf32, #tpu.memory_space<vmem>>, %arg2: memref<32x128xf32, #tpu.memory_space<vmem>>, %arg3: memref<1x128xf32, #tpu.memory_space<vmem>>, %arg4: memref<16x128xf32, #tpu.memory_space<vmem>>) attributes {dimension_semantics = [#tpu.dimension_semantics<parallel>], iteration_bounds = array<i64: 1>, scalar_prefetch = 0 : i64, scratch_operands = 0 : i64, tpu.core_type = #tpu.core_type<tc>, window_params = [{transform_indices = @transform_0, window_bounds = array<i64: 16, 32>}, {pipeline_mode = #tpu.pipeline_mode<synchronous>, transform_indices = @transform_1, window_bounds = array<i64: 32, 128>}, {pipeline_mode = #tpu.pipeline_mode<synchronous>, transform_indices = @transform_2, window_bounds = array<i64: 1, 128>}, {transform_indices = @transform_3, window_bounds = array<i64: 16, 128>}]} {
    %c0 = arith.constant 0 : index
    %c0_0 = arith.constant 0 : index
    %0 = vector.load %arg1[%c0, %c0_0] : memref<16x32xf32, #tpu.memory_space<vmem>>, vector<16x32xf32>
    %c0_1 = arith.constant 0 : index
    %c0_2 = arith.constant 0 : index
    %1 = vector.load %arg2[%c0_1, %c0_2] : memref<32x128xf32, #tpu.memory_space<vmem>>, vector<32x128xf32>
    %cst = arith.constant dense<0.000000e+00> : vector<16x128xf32>
    %2 = tpu.matmul %0, %1, %cst {dimension_numbers = #tpu.dot_dimension_numbers<[1], [0], [0], [1], [0, 0, 1, 1], [], []>} : vector<16x32xf32>, vector<32x128xf32>, vector<16x128xf32> -> vector<16x128xf32>
    %c0_3 = arith.constant 0 : index
    %c0_4 = arith.constant 0 : index
    %3 = vector.load %arg3[%c0_3, %c0_4] : memref<1x128xf32, #tpu.memory_space<vmem>>, vector<1x128xf32>
    %4 = vector.broadcast %3 : vector<1x128xf32> to vector<16x128xf32>
    %5 = arith.addf %2, %4 : vector<16x128xf32>
    %cst_5 = arith.constant 0.000000e+00 : f32
    %6 = vector.broadcast %cst_5 : f32 to vector<16x128xf32>
    %7 = arith.cmpf ogt, %5, %6 : vector<16x128xf32>
    %cst_6 = arith.constant 2.000000e-01 : f32
    %8 = vector.broadcast %cst_6 : f32 to vector<16x128xf32>
    %9 = arith.mulf %8, %5 : vector<16x128xf32>
    %10 = arith.select %7, %5, %9 : vector<16x128xi1>, vector<16x128xf32>
    %11 = arith.mulf %10, %10 : vector<16x128xf32>
    %cst_7 = arith.constant dense<0.000000e+00> : vector<16xf32>
    %12 = vector.multi_reduction <add>, %11, %cst_7 [1] : vector<16x128xf32> to vector<16xf32>
    %13 = vector.shape_cast %12 : vector<16xf32> to vector<16x1xf32>
    %cst_8 = arith.constant 1.000000e-24 : f32
    %14 = vector.broadcast %cst_8 : f32 to vector<16x1xf32>
    %15 = arith.maximumf %13, %14 : vector<16x1xf32>
    %16 = math.rsqrt %15 : vector<16x1xf32>
    %17 = vector.broadcast %16 : vector<16x1xf32> to vector<16x128xf32>
    %18 = arith.mulf %10, %17 : vector<16x128xf32>
    %c0_9 = arith.constant 0 : index
    %c0_10 = arith.constant 0 : index
    %19 = vector.load %arg4[%c0_9, %c0_10] : memref<16x128xf32, #tpu.memory_space<vmem>>, vector<16x128xf32>
    tpu.vector_store %arg4[%c0_9, %c0_10], %18 {strides = array<i32>} : memref<16x128xf32, #tpu.memory_space<vmem>>, vector<16x128xf32>,
    return
  }
  func.func @transform_0(%arg0: i32) -> (i32, i32) {
    %c0_i32 = arith.constant 0 : i32
    %c0_i32_0 = arith.constant 0 : i32
    return %arg0, %c0_i32 : i32, i32
  }
  func.func @transform_1(%arg0: i32) -> (i32, i32) {
    %c0_i32 = arith.constant 0 : i32
    %c0_i32_0 = arith.constant 0 : i32
    %c0_i32_1 = arith.constant 0 : i32
    return %c0_i32, %c0_i32_0 : i32, i32
  }
  func.func @transform_2(%arg0: i32) -> (i32, i32) {
    %c0_i32 = arith.constant 0 : i32
    %c0_i32_0 = arith.constant 0 : i32
    %c0_i32_1 = arith.constant 0 : i32
    return %c0_i32, %c0_i32_0 : i32, i32
  }
  func.func @transform_3(%arg0: i32) -> (i32, i32) {
    %c0_i32 = arith.constant 0 : i32
    %c0_i32_0 = arith.constant 0 : i32
    return %arg0, %c0_i32 : i32, i32
  }
}

</mosaic_0001>

<bundles_post_ra>
// kernel: _apply_single.1
= control target key start
LH: loop header
LB: loop body
LE: loop exit
PB: predicated region body
PF: predicated region fallthrough
CT: control target
= control target key end

     0   :  { %8 = vsyncpa [#allocation3], 0  ;;  %s358_s0 = inlined_call_operand.hbm [shape: f32[10,32], index: 0, kind: input, shape index: {}]   ;;  %s359_s1 = inlined_call_operand.hbm [shape: f32[32,128], index: 1, kind: input, shape index: {}]   ;;  %s360_s2 = inlined_call_operand.vmem [shape: f32[1,128], index: 2, kind: input, shape index: {}]   ;;  %s361_s3 = inlined_call_operand.hbm [shape: f32[10,128], index: 3, kind: output, shape index: {}]  }
   0x1   :  { %9 = vsyncpa [#allocation6], 0 }
   0x2   :  { %10 = vsyncpa [#allocation4], 0  ;;  %s285_s12 = smov [#allocation2]   ;;  %s213_s16 = scalar_lea.hbm %s358_s0, 256 }
   0x3   :  { %s16_s13 = sshll.u32 %s285_s12, 4  ;;  %p214_p0 = scmp.ne.s32.totalorder %s358_s0, %s213_s16  ;;  %s17_s13 = int_to_ptr.vmem [resolvable:$true] %s16_s13 }
   0x4   :  { %p217_p1 = scmp.lt.u32.totalorder %s213_s16, %s358_s0 }
   0x6   :  { %p219_p2 = pnand %p217_p1, %p214_p0 }
   0x8   :  { %222 = shalt.err (!%p219_p2)
}
   0x9   :  { %s223_s21 = scalar_lea.vmem %s17_s13, 256  ;;  %p228_p4 = scmp.lt.s32.totalorder %s17_s13, %s17_s13 }
   0xa   :  { %p224_p3 = scmp.ne.s32.totalorder %s17_s13, %s223_s21  ;;  %p229_p5 = scmp.lt.s32.totalorder %s223_s21, %s223_s21 }
   0xc   :  { %p230_p6 = por %p229_p5, %p228_p4 }
   0xe   :  { %p231_p7 = pnand %p230_p6, %p224_p3 }
  0x10   :  { %234 = shalt.err (!%p231_p7)
}
  0x11   :  { %s286_s22 = smov 128   ;;  %s287_s23 = smov 8  }
  0x12   :  { %22 = dma.hbm_to_vmem [thread:$0]  %s358_s0, 256, %s17_s13, [#allocation3], %s286_s22, %s286_s22, %s287_s23  }
  0x13   :  { %s288_s26 = smov [#allocation5]   ;;  %s235_s30 = scalar_lea.hbm %s359_s1, 512 }
  0x14   :  { %s28_s27 = sshll.u32 %s288_s26, 4  ;;  %p236_p8 = scmp.ne.s32.totalorder %s359_s1, %s235_s30  ;;  %s29_s27 = int_to_ptr.vmem [resolvable:$true] %s28_s27 }
  0x15   :  { %p239_p9 = scmp.lt.u32.totalorder %s235_s30, %s359_s1 }
  0x17   :  { %p241_p10 = pnand %p239_p9, %p236_p8 }
  0x19   :  { %244 = shalt.err (!%p241_p10)
}
  0x1a   :  { %s245_s8 = scalar_lea.vmem %s29_s27, 512  ;;  %p250_p12 = scmp.lt.s32.totalorder %s29_s27, %s29_s27 }
  0x1b   :  { %p246_p11 = scmp.ne.s32.totalorder %s29_s27, %s245_s8  ;;  %p251_p13 = scmp.lt.s32.totalorder %s245_s8, %s245_s8 }
  0x1d   :  { %p252_p0 = por %p251_p13, %p250_p12 }
  0x1f   :  { %p253_p1 = pnand %p252_p0, %p246_p11 }
  0x21   :  { %256 = shalt.err (!%p253_p1)
}
  0x22   :  { %34 = dma.hbm_to_vmem [thread:$0]  %s359_s1, 512, %s29_s27, [#allocation6], %s286_s22, %s286_s22, %s287_s23  }
  0x23   :  { %279 = dma.done.wait [#allocation3], 256  }
  0x24   :  { %280 = vsyncadd [#allocation3], 4294967040 }
  0x25   :  { %281 = dma.done.wait [#allocation6], 512  }
  0x26   :  { %282 = vsyncadd [#allocation6], 4294966784  ;;  %vm56_vm0 = vcmask 261120   ;;  %v45_v0 = vld [vmem:[#allocation5] sm:$0xff]  ;;  %v46_v1 = vld [vmem:[#allocation5 + $0x8] sm:$0xff] }
  0x27   :  { %v47_v2 = vld [vmem:[#allocation5 + $0x10] sm:$0xff]  ;;  %v196_v3 = vpack.c.bf16 %v46_v1, %v45_v0  ;;  %v48_v4 = vld [vmem:[#allocation5 + $0x18] sm:$0xff] }
  0x28   :  { %v43_v5 = vld [vmem:[#allocation2] sm:$0xff]  ;;  %v200_v6 = vpack.c.bf16 %v48_v4, %v47_v2  ;;  %v44_v7 = vld [vmem:[#allocation2 + $0x8] sm:$0xff] }
  0x29   :  { %193 = vmatprep.mubr.msk.f32.mxu0 %vm56_vm0, %v43_v5  ;;  %197 = vmatprep.subr.bf16.mxu0 %v196_v3  ;;  %v176_v8 = vld [vmem:[%s360_s2] ss:$0 sm:$0xff]  ;;  %s289_s2 = smov [#allocation7]  }
  0x2a   :  { %199 = vmatpush3.bf16.msra.mxu0 %v196_v3  ;;  %s163_s11 = sshll.u32 %s289_s2, 4  ;;  %s164_s11 = int_to_ptr.vmem [resolvable:$true] %s163_s11 }
  0x2b   :  { %201 = vmatprep.subr.bf16.mxu0 %v200_v6  ;;  %s257_s12 = scalar_lea.vmem %s164_s11, 256  ;;  %p262_p3 = scmp.lt.s32.totalorder %s164_s11, %s164_s11 }
  0x2c   :  { %p258_p2 = scmp.ne.s32.totalorder %s164_s11, %s257_s12  ;;  %p263_p4 = scmp.lt.s32.totalorder %s257_s12, %s257_s12 }
  0x2e   :  { %203 = vmatpush3.bf16.msra.mxu0 %v200_v6  ;;  %p264_p5 = por %p263_p4, %p262_p3 }
  0x30   :  { %p265_p6 = pnand %p264_p5, %p258_p2 }
  0x31   :  { %194 = vmatmul.mubr.msk.f32.vlgmr.msra.gmra.mrb[0].mxu0 %vm56_vm0, %v44_v7 }
 0x104   :  { %v195_v9 = vpop.f32.mrb[0].mxu0 }
 0x105   :  { %v135_v10 = vadd.f32 %v195_v9, %v176_v8  ;;  %v129_v11 = vpop.f32.mrb[1].mxu0 }
 0x106   :  { %v130_v12 = vadd.f32 %v176_v8, %v129_v11 }
 0x107   :  { %v141_v13 = vmul.f32 0.2, %v135_v10  ;;  %vm139_vm2 = vcmp.gt.f32.partialorder %v135_v10, 0.0 }
 0x108   :  { %v140_v14 = vmul.f32 0.2, %v130_v12  ;;  %vm138_vm1 = vcmp.gt.f32.partialorder %v130_v12, 0.0 }
 0x109   :  { %v143_v17 = vsel %vm139_vm2, %v135_v10, %v141_v13 }
 0x10a   :  { %v142_v15 = vsel %vm138_vm1, %v130_v12, %v140_v14  ;;  %v145_v18 = vmul.f32 %v143_v17, %v143_v17 }
 0x10b   :  { %v144_v16 = vmul.f32 %v142_v15, %v142_v15 }
 0x10d   :  { %146 = vadd.xlane.f32.xlu0 %v144_v16 }
 0x111   :  { %148 = vadd.xlane.f32.xlu0 %v145_v18 }
 0x19a   :  { %v147_v19 = vpop.xlane.xlu0 %146 }
 0x19b   :  { %v150_v20 = vmax.f32 %v147_v19, 1e-24 }
 0x19d   :  { %209 = vrsqrt.f32 %v150_v20 }
 0x19e   :  { %v149_v21 = vpop.xlane.xlu0 %148 }
 0x19f   :  { %v151_v22 = vmax.f32 %v149_v21, 1e-24 }
 0x1a1   :  { %211 = vrsqrt.f32 %v151_v22 }
 0x1a7   :  { %v210_v23 = vpop.eup %209 }
 0x1a8   :  { %v154_v24 = vmul.f32 %v210_v23, %v142_v15 }
 0x1aa   :  { %156 = vst [vmem:[#allocation7] sm:$0xff] %v154_v24 }
 0x1ab   :  { %v212_v25 = vpop.eup %211 }
 0x1ac   :  { %v155_v26 = vmul.f32 %v212_v25, %v143_v17 }
 0x1ae   :  { %157 = vst [vmem:[#allocation7 + $0x8] sm:$0xff] %v155_v26 }
 0x1af   :  { %268 = shalt.err (!%p265_p6)
}
 0x1b0   :  { %s269_s15 = scalar_lea.hbm %s361_s3, 256 }
 0x1b1   :  { %p270_p7 = scmp.ne.s32.totalorder %s361_s3, %s269_s15  ;;  %p273_p8 = scmp.lt.u32.totalorder %s269_s15, %s361_s3 }
 0x1b3   :  { %p275_p9 = pnand %p273_p8, %p270_p7 }
 0x1b5   :  { %278 = shalt.err (!%p275_p9)
}
 0x1b6   :  { %169 = dma.vmem_to_hbm [thread:$0]  %s164_s11, 256, %s361_s3, [#allocation4], %s286_s22, %s286_s22, %s287_s23  }
 0x1b7   :  { %283 = dma.done.wait [#allocation4], 256  }
 0x1b8   :  { %284 = vsyncadd [#allocation4], 4294967040 }
 0x1b9   :  { %173 = vsyncpa [#allocation3], 1 }
 0x1ba   :  { %174 = vsyncpa [#allocation6], 1 }
 0x1bb   :  { %175 = vsyncpa [#allocation4], 1 }

</bundles_post_ra>
